<compile_context>
chip_gen: v5e
topology: v5e:2x2
jax: 0.10.0
libtpu: 0.0.40
codegen_flags: <defaults>
</compile_context>

<pallas_src>
import numpy as np
import jax
import jax.numpy as jnp
from jax.experimental import pallas as pl
from jax.experimental.pallas import tpu as pltpu

ALPHA = 4
# Per-chunk output budget; double-buffered output stays < 16 MiB (safe on
# v5e/v6e/v7x scoped VMEM defaults).
_CHUNK_BYTES_BUDGET = 8 * 1024 * 1024


def _torch_linspace_long(start: int, end: int, steps: int) -> np.ndarray:
    """Replicates torch.linspace(start, end, steps).long() (float32 arithmetic,
    truncating cast) host-side so the selected frames match PyTorch exactly."""
    if steps <= 0:
        return np.zeros((0,), dtype=np.int32)
    if steps == 1:
        return np.array([start], dtype=np.int32)
    step = (np.float32(end) - np.float32(start)) / np.float32(steps - 1)
    vals = np.float32(start) + np.arange(steps, dtype=np.float32) * step
    return vals.astype(np.int32)  # values are non-negative -> trunc == floor == .long()


def _gather_slow_kernel(idx_ref, frames_hbm, o_ref, sems):
    """One grid step gathers `fps` selected frames from HBM into the output
    VMEM block.  All gather DMAs for the chunk are issued first (concurrently
    in flight), then waited on."""
    fps = o_ref.shape[1]
    step = pl.program_id(0)

    def _copy(j):
        t = idx_ref[step * fps + j]  # selected source frame (SMEM scalar read)
        return pltpu.make_async_copy(
            frames_hbm.at[:, pl.ds(t, 1)],   # (C, 1, ...) strided HBM slice
            o_ref.at[:, pl.ds(j, 1)],        # slot j of the output block
            sems.at[j],
        )

    for j in range(fps):   # static unroll: fps is a trace-time constant
        _copy(j).start()
    for j in range(fps):
        _copy(j).wait()


def pack_pathway(frames: jax.Array):
    """Returns [slow_pathway, fast_pathway] matching the PyTorch module."""
    C, T, H, W = frames.shape
    t_slow = T // ALPHA
    fast = frames  # identity pathway (no compute, no copy needed)

    if t_slow == 0:
        # Degenerate clip (T < ALPHA): empty slow pathway, skip the kernel.
        return [jnp.zeros((C, 0, H, W), dtype=frames.dtype), fast]

    # Host-side, torch-exact indices; scalar-prefetched into SMEM.
    idx = jnp.asarray(_torch_linspace_long(0, T - 1, t_slow), dtype=jnp.int32)

    # Lane-dense trailing layout when possible (free reshape: H*W contiguous).
    S = H * W
    if S % 128 == 0:
        x = frames.reshape(C, T, S // 128, 128)
        blk_tail = (S // 128, 128)
    else:
        # TODO(synk): pad spatial dims to a 128-lane multiple for odd sizes.
        x = frames
        blk_tail = (H, W)

    itemsize = np.dtype(frames.dtype).itemsize
    frame_bytes = C * int(np.prod(blk_tail)) * itemsize

    # Largest divisor of t_slow whose output chunk fits the VMEM budget
    # (avoids ragged last chunks; fps >= 1 always).
    fps = 1
    for d in range(t_slow, 0, -1):
        if t_slow % d == 0 and d * frame_bytes <= _CHUNK_BYTES_BUDGET:
            fps = d
            break
    n_steps = t_slow // fps

    slow = pl.pallas_call(
        _gather_slow_kernel,
        out_shape=jax.ShapeDtypeStruct((C, t_slow) + blk_tail, frames.dtype),
        grid_spec=pltpu.PrefetchScalarGridSpec(
            num_scalar_prefetch=1,          # idx -> SMEM, read inside the kernel
            grid=(n_steps,),
            in_specs=[
                pl.BlockSpec(memory_space=pl.ANY),   # frames stay in HBM; manual DMA gather
            ],
            out_specs=pl.BlockSpec(
                (C, fps) + blk_tail, lambda s, idx_ref: (0, s, 0, 0)
            ),
            scratch_shapes=[pltpu.SemaphoreType.DMA((fps,))],
        ),
        compiler_params=pltpu.CompilerParams(
            # Disjoint output blocks per step -> legal to parallelize
            # (lets v7x shard chunks across its two TensorCores).
            dimension_semantics=("parallel",),
        ),
    )(idx, x)

    slow = slow.reshape(C, t_slow, H, W)
    return [slow, fast]


if __name__ == "__main__":
    key = jax.random.PRNGKey(0)
    # Small shapes consistent with a video clip: C=3 channels, T=16 frames, 16x16 spatial.
    C, T, H, W = 3, 16, 16, 16
    frames = jax.random.normal(key, (C, T, H, W), dtype=jnp.float32)

    slow, fast = pack_pathway(frames)
    jax.block_until_ready(slow)
    jax.block_until_ready(fast)

    # Reference check (pure JAX) — mirrors torch.index_select on dim 1 with
    # torch-exact indices.
    ref_idx = jnp.asarray(_torch_linspace_long(0, T - 1, T // ALPHA))
    slow_ref = jnp.take(frames, ref_idx, axis=1)

    assert fast.shape == (C, T, H, W)
    assert slow.shape == (C, T // ALPHA, H, W)
    assert jnp.array_equal(fast, frames)
    assert jnp.array_equal(slow, slow_ref)

    print("KERNEL_OK")
</pallas_src>

<mosaic_0001>
module attributes {stable_mosaic.version = 11 : i64} {
  func.func @_gather_slow_kernel(%arg0: i32, %arg1: memref<4xi32, #tpu.memory_space<smem>>, %arg2: memref<3x16x2x128xf32, #tpu.memory_space<any>>, %arg3: memref<3x4x2x128xf32, #tpu.memory_space<vmem>>, %arg4: memref<4x!tpu.dma_semaphore, #tpu.memory_space<semaphore_mem>>) attributes {dimension_semantics = [#tpu.dimension_semantics<parallel>], iteration_bounds = array<i64: 1>, scalar_prefetch = 1 : i64, scratch_operands = 1 : i64, tpu.core_type = #tpu.core_type<tc>, window_params = [{}, {transform_indices = @transform_1, window_bounds = array<i64: 3, 4, 2, 128>}]} {
    %c4_i32 = arith.constant 4 : i32
    %0 = arith.muli %arg0, %c4_i32 : i32
    %c0_i32 = arith.constant 0 : i32
    %1 = arith.addi %0, %c0_i32 : i32
    %2 = arith.index_cast %1 : i32 to index
    %3 = memref.load %arg1[%2] : memref<4xi32, #tpu.memory_space<smem>>
    %c0_i32_0 = arith.constant 0 : i32
    %c0_i32_1 = arith.constant 0 : i32
    %c0_i32_2 = arith.constant 0 : i32
    %c0_i32_3 = arith.constant 0 : i32
    %4 = tpu.memref_slice %arg2[%c0_i32_1, %3, %c0_i32_2, %c0_i32_3] : memref<3x16x2x128xf32, #tpu.memory_space<any>> -> memref<3x1x2x128xf32, #tpu.memory_space<any>>
    %c0_i32_4 = arith.constant 0 : i32
    %c0_i32_5 = arith.constant 0 : i32
    %c0_i32_6 = arith.constant 0 : i32
    %c0_i32_7 = arith.constant 0 : i32
    %5 = tpu.memref_slice %arg3[%c0_i32_4, %c0_i32_5, %c0_i32_6, %c0_i32_7] : memref<3x4x2x128xf32, #tpu.memory_space<vmem>> -> memref<3x1x2x128xf32, #tpu.memory_space<vmem>>
    %6 = tpu.memref_slice %arg4[%c0_i32_0] : memref<4x!tpu.dma_semaphore, #tpu.memory_space<semaphore_mem>> -> memref<1x!tpu.dma_semaphore, #tpu.memory_space<semaphore_mem>>
    %7 = tpu.memref_squeeze %6 : memref<1x!tpu.dma_semaphore, #tpu.memory_space<semaphore_mem>> -> memref<!tpu.dma_semaphore, #tpu.memory_space<semaphore_mem>>
    tpu.enqueue_dma source(%4 : memref<3x1x2x128xf32, #tpu.memory_space<any>>) target(%5 : memref<3x1x2x128xf32, #tpu.memory_space<vmem>>) target_semaphore(%7 : memref<!tpu.dma_semaphore, #tpu.memory_space<semaphore_mem>>)
    %c4_i32_8 = arith.constant 4 : i32
    %8 = arith.muli %arg0, %c4_i32_8 : i32
    %c1_i32 = arith.constant 1 : i32
    %9 = arith.addi %8, %c1_i32 : i32
    %10 = arith.index_cast %9 : i32 to index
    %11 = memref.load %arg1[%10] : memref<4xi32, #tpu.memory_space<smem>>
    %c1_i32_9 = arith.constant 1 : i32
    %c0_i32_10 = arith.constant 0 : i32
    %c0_i32_11 = arith.constant 0 : i32
    %c0_i32_12 = arith.constant 0 : i32
    %12 = tpu.memref_slice %arg2[%c0_i32_10, %11, %c0_i32_11, %c0_i32_12] : memref<3x16x2x128xf32, #tpu.memory_space<any>> -> memref<3x1x2x128xf32, #tpu.memory_space<any>>
    %c0_i32_13 = arith.constant 0 : i32
    %c1_i32_14 = arith.constant 1 : i32
    %c0_i32_15 = arith.constant 0 : i32
    %c0_i32_16 = arith.constant 0 : i32
    %13 = tpu.memref_slice %arg3[%c0_i32_13, %c1_i32_14, %c0_i32_15, %c0_i32_16] : memref<3x4x2x128xf32, #tpu.memory_space<vmem>> -> memref<3x1x2x128xf32, #tpu.memory_space<vmem>>
    %14 = tpu.memref_slice %arg4[%c1_i32_9] : memref<4x!tpu.dma_semaphore, #tpu.memory_space<semaphore_mem>> -> memref<1x!tpu.dma_semaphore, #tpu.memory_space<semaphore_mem>>
    %15 = tpu.memref_squeeze %14 : memref<1x!tpu.dma_semaphore, #tpu.memory_space<semaphore_mem>> -> memref<!tpu.dma_semaphore, #tpu.memory_space<semaphore_mem>>
    tpu.enqueue_dma source(%12 : memref<3x1x2x128xf32, #tpu.memory_space<any>>) target(%13 : memref<3x1x2x128xf32, #tpu.memory_space<vmem>>) target_semaphore(%15 : memref<!tpu.dma_semaphore, #tpu.memory_space<semaphore_mem>>)
    %c4_i32_17 = arith.constant 4 : i32
    %16 = arith.muli %arg0, %c4_i32_17 : i32
    %c2_i32 = arith.constant 2 : i32
    %17 = arith.addi %16, %c2_i32 : i32
    %18 = arith.index_cast %17 : i32 to index
    %19 = memref.load %arg1[%18] : memref<4xi32, #tpu.memory_space<smem>>
    %c2_i32_18 = arith.constant 2 : i32
    %c0_i32_19 = arith.constant 0 : i32
    %c0_i32_20 = arith.constant 0 : i32
    %c0_i32_21 = arith.constant 0 : i32
    %20 = tpu.memref_slice %arg2[%c0_i32_19, %19, %c0_i32_20, %c0_i32_21] : memref<3x16x2x128xf32, #tpu.memory_space<any>> -> memref<3x1x2x128xf32, #tpu.memory_space<any>>
    %c0_i32_22 = arith.constant 0 : i32
    %c2_i32_23 = arith.constant 2 : i32
    %c0_i32_24 = arith.constant 0 : i32
    %c0_i32_25 = arith.constant 0 : i32
    %21 = tpu.memref_slice %arg3[%c0_i32_22, %c2_i32_23, %c0_i32_24, %c0_i32_25] : memref<3x4x2x128xf32, #tpu.memory_space<vmem>> -> memref<3x1x2x128xf32, #tpu.memory_space<vmem>>
    %22 = tpu.memref_slice %arg4[%c2_i32_18] : memref<4x!tpu.dma_semaphore, #tpu.memory_space<semaphore_mem>> -> memref<1x!tpu.dma_semaphore, #tpu.memory_space<semaphore_mem>>
    %23 = tpu.memref_squeeze %22 : memref<1x!tpu.dma_semaphore, #tpu.memory_space<semaphore_mem>> -> memref<!tpu.dma_semaphore, #tpu.memory_space<semaphore_mem>>
    tpu.enqueue_dma source(%20 : memref<3x1x2x128xf32, #tpu.memory_space<any>>) target(%21 : memref<3x1x2x128xf32, #tpu.memory_space<vmem>>) target_semaphore(%23 : memref<!tpu.dma_semaphore, #tpu.memory_space<semaphore_mem>>)
    %c4_i32_26 = arith.constant 4 : i32
    %24 = arith.muli %arg0, %c4_i32_26 : i32
    %c3_i32 = arith.constant 3 : i32
    %25 = arith.addi %24, %c3_i32 : i32
    %26 = arith.index_cast %25 : i32 to index
    %27 = memref.load %arg1[%26] : memref<4xi32, #tpu.memory_space<smem>>
    %c3_i32_27 = arith.constant 3 : i32
    %c0_i32_28 = arith.constant 0 : i32
    %c0_i32_29 = arith.constant 0 : i32
    %c0_i32_30 = arith.constant 0 : i32
    %28 = tpu.memref_slice %arg2[%c0_i32_28, %27, %c0_i32_29, %c0_i32_30] : memref<3x16x2x128xf32, #tpu.memory_space<any>> -> memref<3x1x2x128xf32, #tpu.memory_space<any>>
    %c0_i32_31 = arith.constant 0 : i32
    %c3_i32_32 = arith.constant 3 : i32
    %c0_i32_33 = arith.constant 0 : i32
    %c0_i32_34 = arith.constant 0 : i32
    %29 = tpu.memref_slice %arg3[%c0_i32_31, %c3_i32_32, %c0_i32_33, %c0_i32_34] : memref<3x4x2x128xf32, #tpu.memory_space<vmem>> -> memref<3x1x2x128xf32, #tpu.memory_space<vmem>>
    %30 = tpu.memref_slice %arg4[%c3_i32_27] : memref<4x!tpu.dma_semaphore, #tpu.memory_space<semaphore_mem>> -> memref<1x!tpu.dma_semaphore, #tpu.memory_space<semaphore_mem>>
    %31 = tpu.memref_squeeze %30 : memref<1x!tpu.dma_semaphore, #tpu.memory_space<semaphore_mem>> -> memref<!tpu.dma_semaphore, #tpu.memory_space<semaphore_mem>>
    tpu.enqueue_dma source(%28 : memref<3x1x2x128xf32, #tpu.memory_space<any>>) target(%29 : memref<3x1x2x128xf32, #tpu.memory_space<vmem>>) target_semaphore(%31 : memref<!tpu.dma_semaphore, #tpu.memory_space<semaphore_mem>>)
    %c4_i32_35 = arith.constant 4 : i32
    %32 = arith.muli %arg0, %c4_i32_35 : i32
    %c0_i32_36 = arith.constant 0 : i32
    %33 = arith.addi %32, %c0_i32_36 : i32
    %34 = arith.index_cast %33 : i32 to index
    %35 = memref.load %arg1[%34] : memref<4xi32, #tpu.memory_space<smem>>
    %c0_i32_37 = arith.constant 0 : i32
    %c0_i32_38 = arith.constant 0 : i32
    %c0_i32_39 = arith.constant 0 : i32
    %c0_i32_40 = arith.constant 0 : i32
    %36 = tpu.memref_slice %arg2[%c0_i32_38, %35, %c0_i32_39, %c0_i32_40] : memref<3x16x2x128xf32, #tpu.memory_space<any>> -> memref<3x1x2x128xf32, #tpu.memory_space<any>>
    %c0_i32_41 = arith.constant 0 : i32
    %c0_i32_42 = arith.constant 0 : i32
    %c0_i32_43 = arith.constant 0 : i32
    %c0_i32_44 = arith.constant 0 : i32
    %37 = tpu.memref_slice %arg3[%c0_i32_41, %c0_i32_42, %c0_i32_43, %c0_i32_44] : memref<3x4x2x128xf32, #tpu.memory_space<vmem>> -> memref<3x1x2x128xf32, #tpu.memory_space<vmem>>
    %38 = tpu.memref_slice %arg4[%c0_i32_37] : memref<4x!tpu.dma_semaphore, #tpu.memory_space<semaphore_mem>> -> memref<1x!tpu.dma_semaphore, #tpu.memory_space<semaphore_mem>>
    %39 = tpu.memref_squeeze %38 : memref<1x!tpu.dma_semaphore, #tpu.memory_space<semaphore_mem>> -> memref<!tpu.dma_semaphore, #tpu.memory_space<semaphore_mem>>
    tpu.wait_dma2 semaphore(%39 : memref<!tpu.dma_semaphore, #tpu.memory_space<semaphore_mem>>) src(%36 : memref<3x1x2x128xf32, #tpu.memory_space<any>>) dst(%37 : memref<3x1x2x128xf32, #tpu.memory_space<vmem>>)
    %c4_i32_45 = arith.constant 4 : i32
    %40 = arith.muli %arg0, %c4_i32_45 : i32
    %c1_i32_46 = arith.constant 1 : i32
    %41 = arith.addi %40, %c1_i32_46 : i32
    %42 = arith.index_cast %41 : i32 to index
    %43 = memref.load %arg1[%42] : memref<4xi32, #tpu.memory_space<smem>>
    %c1_i32_47 = arith.constant 1 : i32
    %c0_i32_48 = arith.constant 0 : i32
    %c0_i32_49 = arith.constant 0 : i32
    %c0_i32_50 = arith.constant 0 : i32
    %44 = tpu.memref_slice %arg2[%c0_i32_48, %43, %c0_i32_49, %c0_i32_50] : memref<3x16x2x128xf32, #tpu.memory_space<any>> -> memref<3x1x2x128xf32, #tpu.memory_space<any>>
    %c0_i32_51 = arith.constant 0 : i32
    %c1_i32_52 = arith.constant 1 : i32
    %c0_i32_53 = arith.constant 0 : i32
    %c0_i32_54 = arith.constant 0 : i32
    %45 = tpu.memref_slice %arg3[%c0_i32_51, %c1_i32_52, %c0_i32_53, %c0_i32_54] : memref<3x4x2x128xf32, #tpu.memory_space<vmem>> -> memref<3x1x2x128xf32, #tpu.memory_space<vmem>>
    %46 = tpu.memref_slice %arg4[%c1_i32_47] : memref<4x!tpu.dma_semaphore, #tpu.memory_space<semaphore_mem>> -> memref<1x!tpu.dma_semaphore, #tpu.memory_space<semaphore_mem>>
    %47 = tpu.memref_squeeze %46 : memref<1x!tpu.dma_semaphore, #tpu.memory_space<semaphore_mem>> -> memref<!tpu.dma_semaphore, #tpu.memory_space<semaphore_mem>>
    tpu.wait_dma2 semaphore(%47 : memref<!tpu.dma_semaphore, #tpu.memory_space<semaphore_mem>>) src(%44 : memref<3x1x2x128xf32, #tpu.memory_space<any>>) dst(%45 : memref<3x1x2x128xf32, #tpu.memory_space<vmem>>)
    %c4_i32_55 = arith.constant 4 : i32
    %48 = arith.muli %arg0, %c4_i32_55 : i32
    %c2_i32_56 = arith.constant 2 : i32
    %49 = arith.addi %48, %c2_i32_56 : i32
    %50 = arith.index_cast %49 : i32 to index
    %51 = memref.load %arg1[%50] : memref<4xi32, #tpu.memory_space<smem>>
    %c2_i32_57 = arith.constant 2 : i32
    %c0_i32_58 = arith.constant 0 : i32
    %c0_i32_59 = arith.constant 0 : i32
    %c0_i32_60 = arith.constant 0 : i32
    %52 = tpu.memref_slice %arg2[%c0_i32_58, %51, %c0_i32_59, %c0_i32_60] : memref<3x16x2x128xf32, #tpu.memory_space<any>> -> memref<3x1x2x128xf32, #tpu.memory_space<any>>
    %c0_i32_61 = arith.constant 0 : i32
    %c2_i32_62 = arith.constant 2 : i32
    %c0_i32_63 = arith.constant 0 : i32
    %c0_i32_64 = arith.constant 0 : i32
    %53 = tpu.memref_slice %arg3[%c0_i32_61, %c2_i32_62, %c0_i32_63, %c0_i32_64] : memref<3x4x2x128xf32, #tpu.memory_space<vmem>> -> memref<3x1x2x128xf32, #tpu.memory_space<vmem>>
    %54 = tpu.memref_slice %arg4[%c2_i32_57] : memref<4x!tpu.dma_semaphore, #tpu.memory_space<semaphore_mem>> -> memref<1x!tpu.dma_semaphore, #tpu.memory_space<semaphore_mem>>
    %55 = tpu.memref_squeeze %54 : memref<1x!tpu.dma_semaphore, #tpu.memory_space<semaphore_mem>> -> memref<!tpu.dma_semaphore, #tpu.memory_space<semaphore_mem>>
    tpu.wait_dma2 semaphore(%55 : memref<!tpu.dma_semaphore, #tpu.memory_space<semaphore_mem>>) src(%52 : memref<3x1x2x128xf32, #tpu.memory_space<any>>) dst(%53 : memref<3x1x2x128xf32, #tpu.memory_space<vmem>>)
    %c4_i32_65 = arith.constant 4 : i32
    %56 = arith.muli %arg0, %c4_i32_65 : i32
    %c3_i32_66 = arith.constant 3 : i32
    %57 = arith.addi %56, %c3_i32_66 : i32
    %58 = arith.index_cast %57 : i32 to index
    %59 = memref.load %arg1[%58] : memref<4xi32, #tpu.memory_space<smem>>
    %c3_i32_67 = arith.constant 3 : i32
    %c0_i32_68 = arith.constant 0 : i32
    %c0_i32_69 = arith.constant 0 : i32
    %c0_i32_70 = arith.constant 0 : i32
    %60 = tpu.memref_slice %arg2[%c0_i32_68, %59, %c0_i32_69, %c0_i32_70] : memref<3x16x2x128xf32, #tpu.memory_space<any>> -> memref<3x1x2x128xf32, #tpu.memory_space<any>>
    %c0_i32_71 = arith.constant 0 : i32
    %c3_i32_72 = arith.constant 3 : i32
    %c0_i32_73 = arith.constant 0 : i32
    %c0_i32_74 = arith.constant 0 : i32
    %61 = tpu.memref_slice %arg3[%c0_i32_71, %c3_i32_72, %c0_i32_73, %c0_i32_74] : memref<3x4x2x128xf32, #tpu.memory_space<vmem>> -> memref<3x1x2x128xf32, #tpu.memory_space<vmem>>
    %62 = tpu.memref_slice %arg4[%c3_i32_67] : memref<4x!tpu.dma_semaphore, #tpu.memory_space<semaphore_mem>> -> memref<1x!tpu.dma_semaphore, #tpu.memory_space<semaphore_mem>>
    %63 = tpu.memref_squeeze %62 : memref<1x!tpu.dma_semaphore, #tpu.memory_space<semaphore_mem>> -> memref<!tpu.dma_semaphore, #tpu.memory_space<semaphore_mem>>
    tpu.wait_dma2 semaphore(%63 : memref<!tpu.dma_semaphore, #tpu.memory_space<semaphore_mem>>) src(%60 : memref<3x1x2x128xf32, #tpu.memory_space<any>>) dst(%61 : memref<3x1x2x128xf32, #tpu.memory_space<vmem>>)
    return
  }
  func.func @transform_1(%arg0: i32, %arg1: memref<4xi32, #tpu.memory_space<smem>>) -> (i32, i32, i32, i32) {
    %c0_i32 = arith.constant 0 : i32
    %c0_i32_0 = arith.constant 0 : i32
    %c0_i32_1 = arith.constant 0 : i32
    %c0_i32_2 = arith.constant 0 : i32
    return %c0_i32, %arg0, %c0_i32_0, %c0_i32_1 : i32, i32, i32, i32
  }
}

</mosaic_0001>

<bundles_post_ra>
// kernel: tpu_custom_call.1
= control target key start
LH: loop header
LB: loop body
LE: loop exit
PB: predicated region body
PF: predicated region fallthrough
CT: control target
= control target key end

     0   :  { %s302_s12 = smov [#allocation4]   ;;  %s401_s0 = inlined_call_operand.hbm [shape: s32[4], index: 0, kind: input, shape index: {}]   ;;  %s402_s1 = inlined_call_operand.hbm [shape: f32[3,16,2,128], index: 1, kind: input, shape index: {}]   ;;  %s403_s2 = inlined_call_operand.hbm [shape: f32[3,4,2,128], index: 2, kind: output, shape index: {}]  }
   0x1   :  { %s8_s11 = sshll.u32 %s401_s0, 4  ;;  %s9_s11 = int_to_ptr.hbm [resolvable:$true] %s8_s11 }
   0x2   :  { %11 = dma.hbm_to_smem %s9_s11, 16, %s302_s12, [#allocation3] }
   0x3   :  { %290 = dma.done.wait [#allocation3], 16 }
   0x4   :  { %291 = vsyncadd [#allocation3], 4294967280 }
   0x5   :  { %14 = sfence }
   0x6   :  { %15 = vsyncpa [#allocation6], 0  ;;  %s17_s13 = sld [smem:[#allocation4]]  ;;  %s303_s14 = smov [#allocation5]  }
   0x7   :  { %s329_s15 = sshll.u32 %s303_s14, 4  ;;  %s332_s16 = sld [smem:[#allocation4 + $0x1]]  ;;  %s23_s15 = int_to_ptr.vmem [resolvable:$true] %s329_s15 }
   0x8   :  { %s334_s17 = sld [smem:[#allocation4 + $0x2]]  ;;  %s304_s18 = smov [#allocation5 + $0x2]  }
   0x9   :  { %s336_s0 = sshll.u32 %s304_s18, 4  ;;  %s305_s23 = smov [#allocation5 + $0x4]   ;;  %s37_s0 = int_to_ptr.vmem [resolvable:$true] %s336_s0 }
   0xa   :  { %s342_s24 = sshll.u32 %s305_s23, 4  ;;  %s349_s3 = scalar_lea.hbm %s402_s1, 96  ;;  %s51_s24 = int_to_ptr.vmem [resolvable:$true] %s342_s24 }
   0xc   :  { %s138_s19 = sshll.u32 %s17_s13, 1 }
   0xd   :  { %s19_s22 = scalar_lea.hbm %s402_s1, %s138_s19  ;;  %s140_s26 = sshll.u32 %s332_s16, 1 }
   0xe   :  { %s20_s25 = sshll.u32 %s19_s22, 4  ;;  %s21_s25 = int_to_ptr.hbm [resolvable:$true] %s20_s25 }
   0xf   :  { %s170_s27 = sshra.s32 %s21_s25, 4  ;;  %s171_s27 = int_to_ptr.hbm [resolvable:$true] %s170_s27 }
  0x10   :  { %s172_s28 = scalar_lea.hbm %s171_s27, 6  ;;  %p175_p1 = scmp.lt.s32.totalorder %s171_s27, %s402_s1 }
  0x11   :  { %p173_p0 = scmp.ne.s32.totalorder %s171_s27, %s172_s28  ;;  %p176_p2 = scmp.lt.s32.totalorder %s349_s3, %s172_s28 }
  0x13   :  { %p177_p3 = por %p176_p2, %p175_p1 }
  0x15   :  { %p178_p4 = pnand %p177_p3, %p173_p0 }
  0x17   :  { %181 = shalt.err (!%p178_p4)  }
  0x18   :  { %s306_s6 = smov 512   ;;  %s307_s7 = smov 128  }
  0x19   :  { %s308_s8 = smov 2   ;;  %s31_s11 = scalar_lea.hbm %s402_s1, %s140_s26 }
  0x1a   :  { %27 = dma.hbm_to_vmem [thread:$0]  %s21_s25, 96, %s23_s15, [#allocation2], %s306_s6, %s307_s7, %s308_s8 }
  0x1b   :  { %s142_s12 = sshll.u32 %s334_s17, 1  ;;  %s34_s13 = sshll.u32 %s31_s11, 4  ;;  %s35_s13 = int_to_ptr.hbm [resolvable:$true] %s34_s13 }
  0x1c   :  { %s45_s18 = scalar_lea.hbm %s402_s1, %s142_s12  ;;  %s194_s20 = sshra.s32 %s35_s13, 4  ;;  %s195_s20 = int_to_ptr.hbm [resolvable:$true] %s194_s20 }
  0x1d   :  { %s48_s19 = sshll.u32 %s45_s18, 4  ;;  %s196_s21 = scalar_lea.hbm %s195_s20, 6  ;;  %s49_s19 = int_to_ptr.hbm [resolvable:$true] %s48_s19 }
  0x1e   :  { %p197_p5 = scmp.ne.s32.totalorder %s195_s20, %s196_s21  ;;  %p199_p6 = scmp.lt.s32.totalorder %s195_s20, %s402_s1 }
  0x1f   :  { %p200_p7 = scmp.lt.s32.totalorder %s349_s3, %s196_s21 }
  0x21   :  { %p201_p8 = por %p200_p7, %p199_p6 }
  0x23   :  { %p202_p9 = pnand %p201_p8, %p197_p5 }
  0x25   :  { %205 = shalt.err (!%p202_p9)  }
  0x26   :  { %41 = dma.hbm_to_vmem [thread:$0]  %s35_s13, 96, %s37_s0, [#allocation2 + $0x1], %s306_s6, %s307_s7, %s308_s8 }
  0x27   :  { %s143_s17 = sld [smem:[#allocation4 + $0x3]]  ;;  %s218_s25 = sshra.s32 %s49_s19, 4  ;;  %s219_s25 = int_to_ptr.hbm [resolvable:$true] %s218_s25 }
  0x28   :  { %s220_s26 = scalar_lea.hbm %s219_s25, 6  ;;  %p223_p11 = scmp.lt.s32.totalorder %s219_s25, %s402_s1 }
  0x29   :  { %p221_p10 = scmp.ne.s32.totalorder %s219_s25, %s220_s26  ;;  %p224_p12 = scmp.lt.s32.totalorder %s349_s3, %s220_s26 }
  0x2b   :  { %p225_p13 = por %p224_p12, %p223_p11 }
  0x2d   :  { %p226_p0 = pnand %p225_p13, %p221_p10 }
  0x2f   :  { %229 = shalt.err (!%p226_p0)  }
  0x30   :  { %55 = dma.hbm_to_vmem [thread:$0]  %s49_s19, 96, %s51_s24, [#allocation2 + $0x2], %s306_s6, %s307_s7, %s308_s8 }
  0x31   :  { %s309_s0 = smov [#allocation5 + $0x6]   ;;  %s144_s30 = sshll.u32 %s143_s17, 1 }
  0x32   :  { %s64_s29 = sshll.u32 %s309_s0, 4  ;;  %s59_s9 = scalar_lea.hbm %s402_s1, %s144_s30  ;;  %s65_s29 = int_to_ptr.vmem [resolvable:$true] %s64_s29 }
  0x33   :  { %s62_s10 = sshll.u32 %s59_s9, 4  ;;  %s63_s10 = int_to_ptr.hbm [resolvable:$true] %s62_s10 }
  0x34   :  { %s242_s11 = sshra.s32 %s63_s10, 4  ;;  %s243_s11 = int_to_ptr.hbm [resolvable:$true] %s242_s11 }
  0x35   :  { %s244_s12 = scalar_lea.hbm %s243_s11, 6  ;;  %p247_p2 = scmp.lt.s32.totalorder %s243_s11, %s402_s1 }
  0x36   :  { %p245_p1 = scmp.ne.s32.totalorder %s243_s11, %s244_s12  ;;  %p248_p3 = scmp.lt.s32.totalorder %s349_s3, %s244_s12 }
  0x38   :  { %p249_p4 = por %p248_p3, %p247_p2 }
  0x3a   :  { %p250_p5 = pnand %p249_p4, %p245_p1 }
  0x3c   :  { %253 = shalt.err (!%p250_p5)  }
  0x3d   :  { %69 = dma.hbm_to_vmem [thread:$0]  %s63_s10, 96, %s65_s29, [#allocation2 + $0x3], %s306_s6, %s307_s7, %s308_s8 }
  0x3e   :  { %292 = dma.done.wait [#allocation2], 96 }
  0x3f   :  { %293 = vsyncadd [#allocation2], 4294967200 }
  0x40   :  { %294 = dma.done.wait [#allocation2 + $0x1], 96 }
  0x41   :  { %295 = vsyncadd [#allocation2 + $0x1], 4294967200 }
  0x42   :  { %296 = dma.done.wait [#allocation2 + $0x2], 96 }
  0x43   :  { %297 = vsyncadd [#allocation2 + $0x2], 4294967200 }
  0x44   :  { %298 = dma.done.wait [#allocation2 + $0x3], 96 }
  0x45   :  { %299 = vsyncadd [#allocation2 + $0x3], 4294967200  ;;  %s91_s1 = sshll.u32 %s403_s2, 4  ;;  %s310_s3 = smov 32   ;;  %s92_s1 = int_to_ptr.hbm [resolvable:$true] %s91_s1 }
  0x46   :  { %97 = dma.vmem_to_hbm [thread:$0]  %s23_s15, 384, %s92_s1, [#allocation6], %s310_s3, %s310_s3, %s308_s8  }
  0x47   :  { %300 = dma.done.wait [#allocation6], 384  }
  0x48   :  { %301 = vsyncadd [#allocation6], 4294966912 }
  0x49   :  { %102 = vsyncpa [#allocation6], 1 }
  0x4a   :  { %103 = vsyncmov [#allocation2] }
  0x4d   :  { %s104_s6 = vpop.sfrf %103 }
  0x4e   :  { %p145_p6 = scmp.ne.s32.totalorder %s104_s6, 0 }
  0x50   :  { %108 = shalt.err (%p145_p6)  }
  0x51   :  { %110 = vsyncmov [#allocation2 + $0x1] }
  0x54   :  { %s111_s7 = vpop.sfrf %110 }
  0x55   :  { %p146_p7 = scmp.ne.s32.totalorder %s111_s7, 0 }
  0x57   :  { %115 = shalt.err (%p146_p7)  }
  0x58   :  { %117 = vsyncmov [#allocation2 + $0x2] }
  0x5b   :  { %s118_s18 = vpop.sfrf %117 }
  0x5c   :  { %p147_p8 = scmp.ne.s32.totalorder %s118_s18, 0 }
  0x5e   :  { %122 = shalt.err (%p147_p8)  }
  0x5f   :  { %124 = vsyncmov [#allocation2 + $0x3] }
  0x62   :  { %s125_s2 = vpop.sfrf %124 }
  0x63   :  { %p148_p9 = scmp.ne.s32.totalorder %s125_s2, 0 }
  0x65   :  { %129 = shalt.err (%p148_p9)  }

</bundles_post_ra>
